<compile_context>
chip_gen: v6e
topology: v6e:2x2x1
jax: 0.10.0
libtpu: 0.0.40
codegen_flags: <defaults>
</compile_context>

<pallas_src>
import functools

import jax
import jax.numpy as jnp
from jax.experimental import pallas as pl
from jax.experimental.pallas import tpu as pltpu

_LANE = 128


def _round_up(n, m):
    return (n + m - 1) // m * m


def fnn_kernel(x_ref, w1_ref, b1_ref, w2_ref, b2_ref, w3_ref, b3_ref, o_ref,
               h1_ref, h2_ref):
    # Layer 1: bf16 MXU matmul, f32 accumulation; bias + ReLU in f32 on the VPU.
    h1 = jnp.dot(x_ref[...], w1_ref[...], preferred_element_type=jnp.float32)
    h1 = jnp.maximum(h1 + b1_ref[...], 0.0)
    h1_ref[...] = h1.astype(h1_ref.dtype)  # bf16 activation scratch in VMEM

    # Layer 2: Linear + ReLU
    h2 = jnp.dot(h1_ref[...], w2_ref[...], preferred_element_type=jnp.float32)
    h2 = jnp.maximum(h2 + b2_ref[...], 0.0)
    h2_ref[...] = h2.astype(h2_ref.dtype)

    # Layer 3: Linear (no activation)
    out = jnp.dot(h2_ref[...], w3_ref[...], preferred_element_type=jnp.float32)
    o_ref[...] = (out + b3_ref[...]).astype(o_ref.dtype)


@functools.partial(jax.jit, static_argnames=("block_b",))
def fnn_forward(x, w1, b1, w2, b2, w3, b3, *, block_b=128):
    """y = relu(relu(x@w1+b1)@w2+b2)@w3+b3. Weights are (in, out); biases (1, out)."""
    B, input_dim = x.shape
    hidden_dim = w1.shape[1]
    output_dim = w3.shape[1]

    # Lane-dense padded feature dims (multiples of 128) and batch tiling.
    in_p = _round_up(input_dim, _LANE)
    hid_p = _round_up(hidden_dim, _LANE)
    out_p = _round_up(output_dim, _LANE)
    block_b = min(block_b, _round_up(B, 8))
    assert block_b % 8 == 0, "batch tile must be a multiple of 8 (sublane)"
    B_p = _round_up(B, block_b)
    grid = (B_p // block_b,)

    def pad2(a, rows, cols, dtype):
        return jnp.pad(a, ((0, rows - a.shape[0]), (0, cols - a.shape[1]))).astype(dtype)

    # bf16 matmul operands (MXU fast path); biases stay f32 (added to the f32 acc).
    x_p = pad2(x, B_p, in_p, jnp.bfloat16)
    w1_p = pad2(w1, in_p, hid_p, jnp.bfloat16)
    w2_p = pad2(w2, hid_p, hid_p, jnp.bfloat16)
    w3_p = pad2(w3, hid_p, out_p, jnp.bfloat16)
    b1_p = pad2(b1, 1, hid_p, jnp.float32)
    b2_p = pad2(b2, 1, hid_p, jnp.float32)
    b3_p = pad2(b3, 1, out_p, jnp.float32)

    in_specs = [
        pl.BlockSpec((block_b, in_p), lambda i: (i, 0)),   # x tile (pipelined per grid step)
        pl.BlockSpec((in_p, hid_p), lambda i: (0, 0)),     # w1 (constant index -> DMA'd once)
        pl.BlockSpec((1, hid_p), lambda i: (0, 0)),        # b1
        pl.BlockSpec((hid_p, hid_p), lambda i: (0, 0)),    # w2
        pl.BlockSpec((1, hid_p), lambda i: (0, 0)),        # b2
        pl.BlockSpec((hid_p, out_p), lambda i: (0, 0)),    # w3
        pl.BlockSpec((1, out_p), lambda i: (0, 0)),        # b3
    ]
    out_spec = pl.BlockSpec((block_b, out_p), lambda i: (i, 0))

    # Advisory cost hint so XLA schedules surrounding ops against this call.
    flops = 2 * B_p * (in_p * hid_p + hid_p * hid_p + hid_p * out_p)
    bytes_accessed = (
        x_p.size * 2
        + (w1_p.size + w2_p.size + w3_p.size) * 2
        + (b1_p.size + b2_p.size + b3_p.size) * 4
        + B_p * out_p * 4
    )
    cost = pl.CostEstimate(flops=flops, transcendentals=0,
                           bytes_accessed=bytes_accessed)

    # VMEM budget: double-buffered x/out tiles + resident (fetched-once) weights
    # and biases (2 pipeline buffers each) + bf16 activation scratch.
    vmem_est = (
        2 * (block_b * in_p * 2 + block_b * out_p * 4)
        + 2 * ((in_p + hid_p) * hid_p + hid_p * out_p) * 2
        + 2 * (2 * hid_p + out_p) * 4
        + 2 * block_b * hid_p * 2
    )
    vmem_limit = int(min(max(2 * vmem_est, 32 * 1024 * 1024), 64 * 1024 * 1024))

    out_padded = pl.pallas_call(
        fnn_kernel,
        out_shape=jax.ShapeDtypeStruct((B_p, out_p), x.dtype),
        grid_spec=pltpu.PrefetchScalarGridSpec(
            num_scalar_prefetch=0,
            grid=grid,
            in_specs=in_specs,
            out_specs=out_spec,
            scratch_shapes=[
                pltpu.VMEM((block_b, hid_p), jnp.bfloat16),  # h1 activations
                pltpu.VMEM((block_b, hid_p), jnp.bfloat16),  # h2 activations
            ],
        ),
        compiler_params=pltpu.CompilerParams(
            dimension_semantics=("parallel",),  # shards batch tiles across v7x's 2 TCs
            vmem_limit_bytes=vmem_limit,
        ),
        cost_estimate=cost,
    )(x_p, w1_p, b1_p, w2_p, b2_p, w3_p, b3_p)

    return out_padded[:B, :output_dim]


def init_fnn_params(key, input_dim, hidden_dim, output_dim, dtype=jnp.float32):
    """Deterministic init mimicking nn.Linear default U(-1/sqrt(fan_in), 1/sqrt(fan_in))."""
    ks = jax.random.split(key, 6)

    def lin(kw, kb, fan_in, fan_out):
        bound = 1.0 / (fan_in ** 0.5)
        w = jax.random.uniform(kw, (fan_in, fan_out), dtype, -bound, bound)
        b = jax.random.uniform(kb, (1, fan_out), dtype, -bound, bound)
        return w, b

    w1, b1 = lin(ks[0], ks[1], input_dim, hidden_dim)
    w2, b2 = lin(ks[2], ks[3], hidden_dim, hidden_dim)
    w3, b3 = lin(ks[4], ks[5], hidden_dim, output_dim)
    return w1, b1, w2, b2, w3, b3


if __name__ == "__main__":
    input_dim, hidden_dim, output_dim = 16, 32, 8
    batch = 256  # 2 grid steps at block_b=128 -> pipelining + v7x megacore use

    key = jax.random.PRNGKey(0)
    k_x, k_p = jax.random.split(key)
    x = jax.random.normal(k_x, (batch, input_dim), jnp.float32)
    params = init_fnn_params(k_p, input_dim, hidden_dim, output_dim)

    out = fnn_forward(x, *params, block_b=128)
    out = jax.block_until_ready(out)

    # Pure-JAX f32 reference for sanity check (kernel uses bf16 matmul operands,
    # so tolerance is loosened accordingly).
    w1, b1, w2, b2, w3, b3 = params
    h1 = jnp.maximum(x @ w1 + b1, 0.0)
    h2 = jnp.maximum(h1 @ w2 + b2, 0.0)
    ref = h2 @ w3 + b3

    assert out.shape == (batch, output_dim)
    assert jnp.allclose(out, ref, atol=2e-2, rtol=2e-2), "mismatch vs reference"

    print("KERNEL_OK")
</pallas_src>

<mosaic_0001>
module attributes {stable_mosaic.version = 11 : i64} {
  func.func @fnn_kernel(%arg0: i32, %arg1: memref<128x128xbf16, #tpu.memory_space<vmem>>, %arg2: memref<128x128xbf16, #tpu.memory_space<vmem>>, %arg3: memref<1x128xf32, #tpu.memory_space<vmem>>, %arg4: memref<128x128xbf16, #tpu.memory_space<vmem>>, %arg5: memref<1x128xf32, #tpu.memory_space<vmem>>, %arg6: memref<128x128xbf16, #tpu.memory_space<vmem>>, %arg7: memref<1x128xf32, #tpu.memory_space<vmem>>, %arg8: memref<128x128xf32, #tpu.memory_space<vmem>>, %arg9: memref<128x128xbf16, #tpu.memory_space<vmem>>, %arg10: memref<128x128xbf16, #tpu.memory_space<vmem>>) attributes {dimension_semantics = [#tpu.dimension_semantics<parallel>], iteration_bounds = array<i64: 2>, scalar_prefetch = 0 : i64, scratch_operands = 2 : i64, tpu.core_type = #tpu.core_type<tc>, window_params = [{transform_indices = @transform_0, window_bounds = array<i64: 128, 128>}, {pipeline_mode = #tpu.pipeline_mode<synchronous>, transform_indices = @transform_1, window_bounds = array<i64: 128, 128>}, {pipeline_mode = #tpu.pipeline_mode<synchronous>, transform_indices = @transform_2, window_bounds = array<i64: 1, 128>}, {pipeline_mode = #tpu.pipeline_mode<synchronous>, transform_indices = @transform_3, window_bounds = array<i64: 128, 128>}, {pipeline_mode = #tpu.pipeline_mode<synchronous>, transform_indices = @transform_4, window_bounds = array<i64: 1, 128>}, {pipeline_mode = #tpu.pipeline_mode<synchronous>, transform_indices = @transform_5, window_bounds = array<i64: 128, 128>}, {pipeline_mode = #tpu.pipeline_mode<synchronous>, transform_indices = @transform_6, window_bounds = array<i64: 1, 128>}, {transform_indices = @transform_7, window_bounds = array<i64: 128, 128>}]} {
    %c0 = arith.constant 0 : index
    %c0_0 = arith.constant 0 : index
    %0 = vector.load %arg1[%c0, %c0_0] : memref<128x128xbf16, #tpu.memory_space<vmem>>, vector<128x128xbf16>
    %c0_1 = arith.constant 0 : index
    %c0_2 = arith.constant 0 : index
    %1 = vector.load %arg2[%c0_1, %c0_2] : memref<128x128xbf16, #tpu.memory_space<vmem>>, vector<128x128xbf16>
    %cst = arith.constant dense<0.000000e+00> : vector<128x128xf32>
    %2 = tpu.matmul %0, %1, %cst {dimension_numbers = #tpu.dot_dimension_numbers<[1], [0], [0], [1], [0, 0, 1, 1], [], []>} : vector<128x128xbf16>, vector<128x128xbf16>, vector<128x128xf32> -> vector<128x128xf32>
    %c0_3 = arith.constant 0 : index
    %c0_4 = arith.constant 0 : index
    %3 = vector.load %arg3[%c0_3, %c0_4] : memref<1x128xf32, #tpu.memory_space<vmem>>, vector<1x128xf32>
    %4 = vector.broadcast %3 : vector<1x128xf32> to vector<128x128xf32>
    %5 = arith.addf %2, %4 : vector<128x128xf32>
    %cst_5 = arith.constant 0.000000e+00 : f32
    %6 = vector.broadcast %cst_5 : f32 to vector<128x128xf32>
    %7 = arith.maximumf %5, %6 : vector<128x128xf32>
    %8 = arith.truncf %7 : vector<128x128xf32> to vector<128x128xbf16>
    %c0_6 = arith.constant 0 : index
    %c0_7 = arith.constant 0 : index
    %9 = vector.load %arg9[%c0_6, %c0_7] : memref<128x128xbf16, #tpu.memory_space<vmem>>, vector<128x128xbf16>
    tpu.vector_store %arg9[%c0_6, %c0_7], %8 {strides = array<i32>} : memref<128x128xbf16, #tpu.memory_space<vmem>>, vector<128x128xbf16>,
    %c0_8 = arith.constant 0 : index
    %c0_9 = arith.constant 0 : index
    %10 = vector.load %arg9[%c0_8, %c0_9] : memref<128x128xbf16, #tpu.memory_space<vmem>>, vector<128x128xbf16>
    %c0_10 = arith.constant 0 : index
    %c0_11 = arith.constant 0 : index
    %11 = vector.load %arg4[%c0_10, %c0_11] : memref<128x128xbf16, #tpu.memory_space<vmem>>, vector<128x128xbf16>
    %cst_12 = arith.constant dense<0.000000e+00> : vector<128x128xf32>
    %12 = tpu.matmul %10, %11, %cst_12 {dimension_numbers = #tpu.dot_dimension_numbers<[1], [0], [0], [1], [0, 0, 1, 1], [], []>} : vector<128x128xbf16>, vector<128x128xbf16>, vector<128x128xf32> -> vector<128x128xf32>
    %c0_13 = arith.constant 0 : index
    %c0_14 = arith.constant 0 : index
    %13 = vector.load %arg5[%c0_13, %c0_14] : memref<1x128xf32, #tpu.memory_space<vmem>>, vector<1x128xf32>
    %14 = vector.broadcast %13 : vector<1x128xf32> to vector<128x128xf32>
    %15 = arith.addf %12, %14 : vector<128x128xf32>
    %cst_15 = arith.constant 0.000000e+00 : f32
    %16 = vector.broadcast %cst_15 : f32 to vector<128x128xf32>
    %17 = arith.maximumf %15, %16 : vector<128x128xf32>
    %18 = arith.truncf %17 : vector<128x128xf32> to vector<128x128xbf16>
    %c0_16 = arith.constant 0 : index
    %c0_17 = arith.constant 0 : index
    %19 = vector.load %arg10[%c0_16, %c0_17] : memref<128x128xbf16, #tpu.memory_space<vmem>>, vector<128x128xbf16>
    tpu.vector_store %arg10[%c0_16, %c0_17], %18 {strides = array<i32>} : memref<128x128xbf16, #tpu.memory_space<vmem>>, vector<128x128xbf16>,
    %c0_18 = arith.constant 0 : index
    %c0_19 = arith.constant 0 : index
    %20 = vector.load %arg10[%c0_18, %c0_19] : memref<128x128xbf16, #tpu.memory_space<vmem>>, vector<128x128xbf16>
    %c0_20 = arith.constant 0 : index
    %c0_21 = arith.constant 0 : index
    %21 = vector.load %arg6[%c0_20, %c0_21] : memref<128x128xbf16, #tpu.memory_space<vmem>>, vector<128x128xbf16>
    %cst_22 = arith.constant dense<0.000000e+00> : vector<128x128xf32>
    %22 = tpu.matmul %20, %21, %cst_22 {dimension_numbers = #tpu.dot_dimension_numbers<[1], [0], [0], [1], [0, 0, 1, 1], [], []>} : vector<128x128xbf16>, vector<128x128xbf16>, vector<128x128xf32> -> vector<128x128xf32>
    %c0_23 = arith.constant 0 : index
    %c0_24 = arith.constant 0 : index
    %23 = vector.load %arg7[%c0_23, %c0_24] : memref<1x128xf32, #tpu.memory_space<vmem>>, vector<1x128xf32>
    %24 = vector.broadcast %23 : vector<1x128xf32> to vector<128x128xf32>
    %25 = arith.addf %22, %24 : vector<128x128xf32>
    %c0_25 = arith.constant 0 : index
    %c0_26 = arith.constant 0 : index
    %26 = vector.load %arg8[%c0_25, %c0_26] : memref<128x128xf32, #tpu.memory_space<vmem>>, vector<128x128xf32>
    tpu.vector_store %arg8[%c0_25, %c0_26], %25 {strides = array<i32>} : memref<128x128xf32, #tpu.memory_space<vmem>>, vector<128x128xf32>,
    return
  }
  func.func @transform_0(%arg0: i32) -> (i32, i32) {
    %c0_i32 = arith.constant 0 : i32
    %c0_i32_0 = arith.constant 0 : i32
    return %arg0, %c0_i32 : i32, i32
  }
  func.func @transform_1(%arg0: i32) -> (i32, i32) {
    %c0_i32 = arith.constant 0 : i32
    %c0_i32_0 = arith.constant 0 : i32
    %c0_i32_1 = arith.constant 0 : i32
    return %c0_i32, %c0_i32_0 : i32, i32
  }
  func.func @transform_2(%arg0: i32) -> (i32, i32) {
    %c0_i32 = arith.constant 0 : i32
    %c0_i32_0 = arith.constant 0 : i32
    %c0_i32_1 = arith.constant 0 : i32
    return %c0_i32, %c0_i32_0 : i32, i32
  }
  func.func @transform_3(%arg0: i32) -> (i32, i32) {
    %c0_i32 = arith.constant 0 : i32
    %c0_i32_0 = arith.constant 0 : i32
    %c0_i32_1 = arith.constant 0 : i32
    return %c0_i32, %c0_i32_0 : i32, i32
  }
  func.func @transform_4(%arg0: i32) -> (i32, i32) {
    %c0_i32 = arith.constant 0 : i32
    %c0_i32_0 = arith.constant 0 : i32
    %c0_i32_1 = arith.constant 0 : i32
    return %c0_i32, %c0_i32_0 : i32, i32
  }
  func.func @transform_5(%arg0: i32) -> (i32, i32) {
    %c0_i32 = arith.constant 0 : i32
    %c0_i32_0 = arith.constant 0 : i32
    %c0_i32_1 = arith.constant 0 : i32
    return %c0_i32, %c0_i32_0 : i32, i32
  }
  func.func @transform_6(%arg0: i32) -> (i32, i32) {
    %c0_i32 = arith.constant 0 : i32
    %c0_i32_0 = arith.constant 0 : i32
    %c0_i32_1 = arith.constant 0 : i32
    return %c0_i32, %c0_i32_0 : i32, i32
  }
  func.func @transform_7(%arg0: i32) -> (i32, i32) {
    %c0_i32 = arith.constant 0 : i32
    %c0_i32_0 = arith.constant 0 : i32
    return %arg0, %c0_i32 : i32, i32
  }
}

</mosaic_0001>

<bundles_post_ra>
// kernel: fnn_forward.1
= control target key start
LH: loop header
LB: loop body
LE: loop exit
PB: predicated region body
PF: predicated region fallthrough
CT: control target
= control target key end

     0   :  { %s1727_s24 = smov 0   ;;  %s1899_s0 = inlined_call_operand.vmem [shape: bf16[256,128], index: 0, kind: input, shape index: {}]   ;;  %s1900_s1 = inlined_call_operand.vmem [shape: bf16[128,128], index: 1, kind: input, shape index: {}]   ;;  %s1901_s2 = inlined_call_operand.vmem [shape: f32[1,128], index: 2, kind: input, shape index: {}]   ;;  %s1902_s3 = inlined_call_operand.vmem [shape: bf16[128,128], index: 3, kind: input, shape index: {}]   ;;  %s1903_s4 = inlined_call_operand.vmem [shape: f32[1,128], index: 4, kind: input, shape index: {}]   ;;  %s1904_s5 = inlined_call_operand.vmem [shape: bf16[128,128], index: 5, kind: input, shape index: {}]   ;;  %s1905_s6 = inlined_call_operand.vmem [shape: f32[1,128], index: 6, kind: input, shape index: {}]   ;;  %s1906_s7 = inlined_call_operand.vmem [shape: f32[256,128], index: 7, kind: output, shape index: {}]  }
   0x1 LB: > { %s1243_s25 = sadd.s32 4294967295, %s1685_s24   ;;  %p1247_p0 = scmp.ge.s32.totalorder %s1685_s24, 1  ;;  %s1685_s24 = sphi %s1727_s24, %s17_s24  }
   0x2   : > { %p238_p1 = scmp.lt.s32.totalorder %s1685_s24, 3 }
   0x4   : > { %p239_p2 = pnand %p1247_p0, %p238_p1 }
   0x5   : > { %s1248_s28 = sshll.u32 (!%p239_p2), %s1243_s25, 4 }
   0x6   : > { %242 = sbr.rel (%p239_p2) target bundleno = 698 (0x2ba), region = 48  ;;  %p271_p3 = scmp.lt.s32.totalorder (!%p239_p2), %s1248_s28, 31 }
   0xb   : > { %v1631_v0 = vld [vmem:[%s1900_s1 + $0x38] sm:$0xff]   ;;  %v1632_v1 = vld [vmem:[%s1900_s1 + $0x30] sm:$0xff]   ;;  %s1908_s28 = smov (!%p271_p3, %s1248_s28), 31  ;;  %v1633_v2 = vld [vmem:[%s1900_s1 + $0x28] sm:$0xff]  }
   0xc   : > { %1511 = vmatprep.subr.bf16.mxu0 %v1631_v0  ;;  %s1249_s10 = sshll.u32 %s1908_s28, 2  ;;  %v1634_v3 = vld [vmem:[%s1900_s1 + $0x20] sm:$0xff]   ;;  %v1635_v5 = vld [vmem:[%s1900_s1 + $0x18] sm:$0xff]   ;;  %v1636_v6 = vld [vmem:[%s1900_s1 + $0x10] sm:$0xff]   ;;  %s1251_s18 = sshll.u32 %s1908_s28, 3 }
   0xd   : > { %1512 = vmatpush3.bf16.msra.mxu0 %v1631_v0  ;;  %s1750_s13 = scalar_lea.vmem %s1899_s0, %s1249_s10  ;;  %v1647_v7 = vld [vmem:[%s1902_s3 + $0x38] sm:$0xff]   ;;  %v1648_v8 = vld [vmem:[%s1902_s3 + $0x30] sm:$0xff]   ;;  %v1637_v9 = vld [vmem:[%s1900_s1 + $0x8] sm:$0xff]   ;;  %s1878_s23 = scalar_lea.vmem %s1906_s7, %s1251_s18 }
   0xe   : > { %1513 = vmatprep.subr.bf16.mxu0 %v1632_v1  ;;  %v1639_v4 = vld [vmem:[%s1750_s13] sm:$0xff]   ;;  %1543 = vmatprep.subr.bf16.mxu1 %v1647_v7  ;;  %v1640_v11 = vld [vmem:[%s1750_s13 + $0x8] sm:$0xff]   ;;  %v1641_v12 = vld [vmem:[%s1750_s13 + $0x10] sm:$0xff]  }
   0xf   : > { %1527 = vmatprep.mubr.bf16.mxu0 %v1639_v4  ;;  %1544 = vmatpush3.bf16.msra.mxu1 %v1647_v7  ;;  %v1638_v10 = vld [vmem:[%s1900_s1] sm:$0xff]   ;;  %v1642_v13 = vld [vmem:[%s1750_s13 + $0x18] sm:$0xff]   ;;  %v1644_v15 = vld [vmem:[%s1750_s13 + $0x28] sm:$0xff]  }
  0x10   : > { %1545 = vmatprep.subr.bf16.mxu1 %v1648_v8  ;;  %v1643_v14 = vld [vmem:[%s1750_s13 + $0x20] sm:$0xff]   ;;  %v1645_v16 = vld [vmem:[%s1750_s13 + $0x30] sm:$0xff]   ;;  %v1646_v17 = vld [vmem:[%s1750_s13 + $0x38] sm:$0xff]  }
  0x11   : > { %1514 = vmatpush3.bf16.msra.mxu0 %v1632_v1  ;;  %v1649_v18 = vld [vmem:[%s1902_s3 + $0x28] sm:$0xff]   ;;  %v1650_v19 = vld [vmem:[%s1902_s3 + $0x20] sm:$0xff]   ;;  %v1651_v20 = vld [vmem:[%s1902_s3 + $0x18] sm:$0xff]  }
  0x12   : > { %1515 = vmatprep.subr.bf16.mxu0 %v1633_v2  ;;  %v1652_v21 = vld [vmem:[%s1902_s3 + $0x10] sm:$0xff]   ;;  %v1653_v22 = vld [vmem:[%s1902_s3 + $0x8] sm:$0xff]   ;;  %v1654_v23 = vld [vmem:[%s1902_s3] sm:$0xff]  }
  0x13   : > { %1546 = vmatpush3.bf16.msra.mxu1 %v1648_v8  ;;  %v1663_v24 = vld [vmem:[%s1904_s5 + $0x38] sm:$0xff]   ;;  %v1805_v25 = vld [vmem:[%s1904_s5 + $0x30] sm:$0xff]   ;;  %v1812_v27 = vld [vmem:[%s1901_s2] ss:$0 sm:$0xff] }
  0x14   : > { %1547 = vmatprep.subr.bf16.mxu1 %v1649_v18 }
  0x15   : > { %1516 = vmatpush3.bf16.msra.mxu0 %v1633_v2 }
  0x16   : > { %1517 = vmatprep.subr.bf16.mxu0 %v1634_v3 }
  0x17   : > { %1548 = vmatpush3.bf16.msra.mxu1 %v1649_v18 }
  0x18   : > { %1549 = vmatprep.subr.bf16.mxu1 %v1650_v19 }
  0x19   : > { %1518 = vmatpush3.bf16.msra.mxu0 %v1634_v3 }
  0x1a   : > { %1519 = vmatprep.subr.bf16.mxu0 %v1635_v5 }
  0x1b   : > { %1550 = vmatpush3.bf16.msra.mxu1 %v1650_v19 }
  0x1c   : > { %1551 = vmatprep.subr.bf16.mxu1 %v1651_v20 }
  0x1d   : > { %1520 = vmatpush3.bf16.msra.mxu0 %v1635_v5 }
  0x1e   : > { %1521 = vmatprep.subr.bf16.mxu0 %v1636_v6 }
  0x1f   : > { %1552 = vmatpush3.bf16.msra.mxu1 %v1651_v20 }
  0x20   : > { %1553 = vmatprep.subr.bf16.mxu1 %v1652_v21 }
  0x21   : > { %1522 = vmatpush3.bf16.msra.mxu0 %v1636_v6 }
  0x22   : > { %1523 = vmatprep.subr.bf16.mxu0 %v1637_v9 }
  0x23   : > { %1554 = vmatpush3.bf16.msra.mxu1 %v1652_v21 }
  0x24   : > { %1555 = vmatprep.subr.bf16.mxu1 %v1653_v22 }
  0x25   : > { %1524 = vmatpush3.bf16.msra.mxu0 %v1637_v9 }
  0x26   : > { %1525 = vmatprep.subr.bf16.mxu0 %v1638_v10 }
  0x27   : > { %1556 = vmatpush3.bf16.msra.mxu1 %v1653_v22 }
  0x28   : > { %1557 = vmatprep.subr.bf16.mxu1 %v1654_v23 }
  0x29   : > { %1526 = vmatpush3.bf16.msra.mxu0 %v1638_v10 }
  0x2a   : > { %1575 = vmatprep.subr.bf16.mxu0 %v1663_v24 }
  0x2b   : > { %1558 = vmatpush3.bf16.msra.mxu1 %v1654_v23 }
  0x2c   : > { %1528 = vmatmul.mubr.bf16.vlgmr.msra.gmra.mxu0 %v1640_v11  ;;  %1607 = vmatprep.subr.bf16.mxu1 %v1663_v24 }
  0x2d   : > { %1531 = vmatprep.mubr.bf16.mxu0 %v1641_v12  ;;  %1576 = vmatpush3.bf16.msra.mxu0 %v1663_v24 }
  0x2e   : > { %1577 = vmatprep.subr.bf16.mxu0 %v1805_v25 }
  0x31   : > { %1578 = vmatpush3.bf16.msra.mxu0 %v1805_v25 }
  0x34   : > { %1532 = vmatmul.mubr.bf16.gmra.mxu0 %v1642_v13 }
  0x35   : > { %1535 = vmatprep.mubr.bf16.mxu0 %v1643_v14 }
  0x3c   : > { %1536 = vmatmul.mubr.bf16.gmra.mxu0 %v1644_v15 }
  0x3d   : > { %1539 = vmatprep.mubr.bf16.mxu0 %v1645_v16 }
  0x44   : > { %1540 = vmatmul.mubr.bf16.gmra.mxu0 %v1646_v17 }
  0xec   : > { %v1529_v26 = vpop.f32.mrf.mxu0 }
  0xed   : > { %v461_v29 = vadd.f32 %v1529_v26, %v1812_v27 }
  0xee   : > { %v452_v28 = vpop.f32.mrf.mxu0 }
  0xef   : > { %v453_v31 = vadd.f32 %v1812_v27, %v452_v28  ;;  %v517_v34 = vmax.f32 %v461_v29, 0.0  ;;  %v1665_v28 = vld [vmem:[%s1904_s5 + $0x28] sm:$0xff]   ;;  %v1667_v29 = vld [vmem:[%s1904_s5 + $0x18] sm:$0xff]  }
  0xf0   : > { %v1530_v30 = vpop.f32.mrf.mxu0  ;;  %1579 = vmatprep.subr.bf16.mxu0 %v1665_v28 }
  0xf1   : > { %v464_v32 = vadd.f32 %v1530_v30, %v1812_v27  ;;  %v515_v38 = vmax.f32 %v453_v31, 0.0  ;;  %1580 = vmatpush3.bf16.msra.mxu0 %v1665_v28  ;;  %v1668_v30 = vld [vmem:[%s1904_s5 + $0x10] sm:$0xff]   ;;  %v1669_v31 = vld [vmem:[%s1904_s5 + $0x8] sm:$0xff]  }
  0xf2   : > { %v455_v33 = vpop.f32.mrf.mxu0 }
  0xf3   : > { %v518_v35 = vmax.f32 %v464_v32, 0.0  ;;  %v456_v36 = vadd.f32 %v1812_v27, %v455_v33  ;;  %v1670_v32 = vld [vmem:[%s1904_s5] sm:$0xff]  }
  0xf4   : > { %v1533_v37 = vpop.f32.mrf.mxu0 }
  0xf5   : > { %v1377_v39 = vpack.c.bf16 %v518_v35, %v517_v34  ;;  %v516_v40 = vmax.f32 %v456_v36, 0.0  ;;  %v477_v43 = vadd.f32 %v1533_v37, %v1812_v27  ;;  %v1853_v34 = vld [vmem:[%s1903_s4] ss:$0 sm:$0xff] }
  0xf6   : > { %v468_v41 = vpop.f32.mrf.mxu0 }
  0xf7   : > { %1449 = vst [vmem:[#allocation2 + $0x8] sm:$0xff] %v1377_v39   ;;  %v1372_v42 = vpack.c.bf16 %v516_v40, %v515_v38  ;;  %v469_v45 = vadd.f32 %v1812_v27, %v468_v41  ;;  %v521_v48 = vmax.f32 %v477_v43, 0.0 }
  0xf8   : > { %v1534_v44 = vpop.f32.mrf.mxu0 }
  0xf9   : > { %1373 = vst [vmem:[#allocation2] sm:$0xff] %v1372_v42   ;;  %v480_v46 = vadd.f32 %v1534_v44, %v1812_v27  ;;  %v519_v52 = vmax.f32 %v469_v45, 0.0 }
  0xfa   : > { %v471_v47 = vpop.f32.mrf.mxu0 }
  0xfb   : > { %v522_v49 = vmax.f32 %v480_v46, 0.0  ;;  %v472_v50 = vadd.f32 %v1812_v27, %v471_v47 }
  0xfc   : > { %v1537_v51 = vpop.f32.mrf.mxu0 }
  0xfd   : > { %v1387_v53 = vpack.c.bf16 %v522_v49, %v521_v48  ;;  %v520_v54 = vmax.f32 %v472_v50, 0.0  ;;  %v493_v57 = vadd.f32 %v1537_v51, %v1812_v27 }
  0xfe   : > { %v484_v55 = vpop.f32.mrf.mxu0  ;;  %v1656_v62 = vld [vmem:[#allocation2 + $0x8] sm:$0xff]  }
  0xff   : > { %1451 = vst [vmem:[#allocation2 + $0x18] sm:$0xff] %v1387_v53   ;;  %v1382_v56 = vpack.c.bf16 %v520_v54, %v519_v52  ;;  %v485_v60 = vadd.f32 %v1812_v27, %v484_v55  ;;  %v525_v0 = vmax.f32 %v493_v57, 0.0 }
 0x100   : > { %v1538_v58 = vpop.f32.mrf.mxu0  ;;  %v1655_v59 = vld [vmem:[#allocation2] sm:$0xff]  }
 0x101   : > { %1450 = vst [vmem:[#allocation2 + $0x10] sm:$0xff] %v1382_v56   ;;  %v496_v61 = vadd.f32 %v1538_v58, %v1812_v27  ;;  %1559 = vmatprep.mubr.bf16.mxu1 %v1655_v59  ;;  %v523_v4 = vmax.f32 %v485_v60, 0.0 }
 0x102   : > { %v487_v63 = vpop.f32.mrf.mxu0  ;;  %1560 = vmatmul.mubr.bf16.vlgmr.msra.gmra.mxu1 %v1656_v62 }
 0x103   : > { %v526_v1 = vmax.f32 %v496_v61, 0.0  ;;  %v488_v2 = vadd.f32 %v1812_v27, %v487_v63  ;;  %1615 = vmatpush3.bf16.msra.mxu1 %v1663_v24 }
 0x104   : > { %v1541_v3 = vpop.f32.mrf.mxu0  ;;  %1608 = vmatprep.subr.bf16.mxu1 %v1805_v25 }
 0x105   : > { %v1397_v5 = vpack.c.bf16 %v526_v1, %v525_v0  ;;  %v524_v6 = vmax.f32 %v488_v2, 0.0  ;;  %v509_v9 = vadd.f32 %v1541_v3, %v1812_v27 }
 0x106   : > { %v500_v7 = vpop.f32.mrf.mxu0  ;;  %v1658_v14 = vld [vmem:[#allocation2 + $0x18] sm:$0xff]  }
 0x107   : > { %1453 = vst [vmem:[#allocation2 + $0x28] sm:$0xff] %v1397_v5   ;;  %v1392_v8 = vpack.c.bf16 %v524_v6, %v523_v4  ;;  %1616 = vmatpush3.bf16.msra.mxu1 %v1805_v25  ;;  %v501_v12 = vadd.f32 %v1812_v27, %v500_v7  ;;  %v529_v16 = vmax.f32 %v509_v9, 0.0 }
 0x108   : > { %v1542_v10 = vpop.f32.mrf.mxu0  ;;  %v1657_v11 = vld [vmem:[#allocation2 + $0x10] sm:$0xff]   ;;  %1609 = vmatprep.subr.bf16.mxu1 %v1665_v28 }
 0x109   : > { %1452 = vst [vmem:[#allocation2 + $0x20] sm:$0xff] %v1392_v8   ;;  %v512_v13 = vadd.f32 %v1542_v10, %v1812_v27  ;;  %1563 = vmatprep.mubr.bf16.mxu1 %v1657_v11  ;;  %v527_v19 = vmax.f32 %v501_v12, 0.0 }
 0x10a   : > { %v503_v15 = vpop.f32.mrf.mxu0  ;;  %1564 = vmatmul.mubr.bf16.gmra.mxu1 %v1658_v14 }
 0x10b   : > { %v530_v17 = vmax.f32 %v512_v13, 0.0  ;;  %v504_v18 = vadd.f32 %v1812_v27, %v503_v15  ;;  %1617 = vmatpush3.bf16.msra.mxu1 %v1665_v28  ;;  %v1666_v27 = vld [vmem:[%s1904_s5 + $0x20] sm:$0xff]  }
 0x10c   : > { %1581 = vmatprep.subr.bf16.mxu0 %v1666_v27  ;;  %1610 = vmatprep.subr.bf16.mxu1 %v1666_v27 }
 0x10d   : > { %v1407_v20 = vpack.c.bf16 %v530_v17, %v529_v16  ;;  %v528_v21 = vmax.f32 %v504_v18, 0.0  ;;  %1582 = vmatpush3.bf16.msra.mxu0 %v1666_v27 }
 0x10e   : > { %v1660_v24 = vld [vmem:[#allocation2 + $0x28] sm:$0xff]   ;;  %1583 = vmatprep.subr.bf16.mxu0 %v1667_v29 }
 0x10f   : > { %1455 = vst [vmem:[#allocation2 + $0x38] sm:$0xff] %v1407_v20   ;;  %v1402_v22 = vpack.c.bf16 %v528_v21, %v527_v19  ;;  %1618 = vmatpush3.bf16.msra.mxu1 %v1666_v27 }
 0x110   : > { %v1659_v23 = vld [vmem:[#allocation2 + $0x20] sm:$0xff]   ;;  %1611 = vmatprep.subr.bf16.mxu1 %v1667_v29 }
 0x111   : > { %1454 = vst [vmem:[#allocation2 + $0x30] sm:$0xff] %v1402_v22   ;;  %1567 = vmatprep.mubr.bf16.mxu1 %v1659_v23  ;;  %1584 = vmatpush3.bf16.msra.mxu0 %v1667_v29 }
 0x112   : > { %1568 = vmatmul.mubr.bf16.gmra.mxu1 %v1660_v24  ;;  %1585 = vmatprep.subr.bf16.mxu0 %v1668_v30 }
 0x113   : > { %1619 = vmatpush3.bf16.msra.mxu1 %v1667_v29 }
 0x114   : > { %1612 = vmatprep.subr.bf16.mxu1 %v1668_v30 }
 0x115   : > { %1586 = vmatpush3.bf16.msra.mxu0 %v1668_v30 }
 0x116   : > { %v1662_v26 = vld [vmem:[#allocation2 + $0x38] sm:$0xff]   ;;  %1587 = vmatprep.subr.bf16.mxu0 %v1669_v31 }
 0x117   : > { %1620 = vmatpush3.bf16.msra.mxu1 %v1668_v30 }
 0x118   : > { %v1661_v25 = vld [vmem:[#allocation2 + $0x30] sm:$0xff]   ;;  %1613 = vmatprep.subr.bf16.mxu1 %v1669_v31 }
 0x119   : > { %1571 = vmatprep.mubr.bf16.mxu1 %v1661_v25  ;;  %1588 = vmatpush3.bf16.msra.mxu0 %v1669_v31 }
 0x11a   : > { %1572 = vmatmul.mubr.bf16.gmra.mxu1 %v1662_v26  ;;  %1589 = vmatprep.subr.bf16.mxu0 %v1670_v32 }
 0x11b   : > { %1621 = vmatpush3.bf16.msra.mxu1 %v1669_v31 }
 0x11c   : > { %1614 = vmatprep.subr.bf16.mxu1 %v1670_v32 }
 0x11d   : > { %1590 = vmatpush3.bf16.msra.mxu0 %v1670_v32 }
 0x11f   : > { %1622 = vmatpush3.bf16.msra.mxu1 %v1670_v32 }
 0x1c2   : > { %v1561_v33 = vpop.f32.mrf.mxu1 }
 0x1c3   : > { %v789_v36 = vadd.f32 %v1561_v33, %v1853_v34 }
 0x1c4   : > { %v780_v35 = vpop.f32.mrf.mxu1 }
 0x1c5   : > { %v781_v38 = vadd.f32 %v1853_v34, %v780_v35  ;;  %v845_v41 = vmax.f32 %v789_v36, 0.0 }
 0x1c6   : > { %v1562_v37 = vpop.f32.mrf.mxu1 }
 0x1c7   : > { %v792_v39 = vadd.f32 %v1562_v37, %v1853_v34  ;;  %v843_v45 = vmax.f32 %v781_v38, 0.0 }
 0x1c8   : > { %v783_v40 = vpop.f32.mrf.mxu1 }
 0x1c9   : > { %v846_v42 = vmax.f32 %v792_v39, 0.0  ;;  %v784_v43 = vadd.f32 %v1853_v34, %v783_v40 }
 0x1ca   : > { %v1565_v44 = vpop.f32.mrf.mxu1 }
 0x1cb   : > { %v1417_v46 = vpack.c.bf16 %v846_v42, %v845_v41  ;;  %v844_v47 = vmax.f32 %v784_v43, 0.0  ;;  %v805_v50 = vadd.f32 %v1565_v44, %v1853_v34 }
 0x1cc   : > { %v796_v48 = vpop.f32.mrf.mxu1 }
 0x1cd   : > { %1456 = vst [vmem:[#allocation3 + $0x8] sm:$0xff] %v1417_v46   ;;  %v1412_v49 = vpack.c.bf16 %v844_v47, %v843_v45  ;;  %v797_v52 = vadd.f32 %v1853_v34, %v796_v48  ;;  %v849_v55 = vmax.f32 %v805_v50, 0.0 }
 0x1ce   : > { %v1566_v51 = vpop.f32.mrf.mxu1 }
 0x1cf   : > { %1413 = vst [vmem:[#allocation3] sm:$0xff] %v1412_v49   ;;  %v808_v53 = vadd.f32 %v1566_v51, %v1853_v34  ;;  %v847_v59 = vmax.f32 %v797_v52, 0.0 }
 0x1d0   : > { %v799_v54 = vpop.f32.mrf.mxu1 }
 0x1d1   : > { %v850_v56 = vmax.f32 %v808_v53, 0.0  ;;  %v800_v57 = vadd.f32 %v1853_v34, %v799_v54 }
 0x1d2   : > { %v1569_v58 = vpop.f32.mrf.mxu1 }
 0x1d3   : > { %v1427_v60 = vpack.c.bf16 %v850_v56, %v849_v55  ;;  %v848_v61 = vmax.f32 %v800_v57, 0.0  ;;  %v821_v0 = vadd.f32 %v1569_v58, %v1853_v34 }
 0x1d4   : > { %v812_v62 = vpop.f32.mrf.mxu1  ;;  %v1672_v5 = vld [vmem:[#allocation3 + $0x8] sm:$0xff]  }
 0x1d5   : > { %1458 = vst [vmem:[#allocation3 + $0x18] sm:$0xff] %v1427_v60   ;;  %v1422_v63 = vpack.c.bf16 %v848_v61, %v847_v59  ;;  %v813_v3 = vadd.f32 %v1853_v34, %v812_v62  ;;  %v853_v7 = vmax.f32 %v821_v0, 0.0 }
 0x1d6   : > { %v1570_v1 = vpop.f32.mrf.mxu1  ;;  %v1671_v2 = vld [vmem:[#allocation3] sm:$0xff]  }
 0x1d7   : > { %1457 = vst [vmem:[#allocation3 + $0x10] sm:$0xff] %v1422_v63   ;;  %v824_v4 = vadd.f32 %v1570_v1, %v1853_v34  ;;  %1591 = vmatprep.mubr.bf16.mxu0 %v1671_v2  ;;  %v851_v11 = vmax.f32 %v813_v3, 0.0 }
 0x1d8   : > { %v815_v6 = vpop.f32.mrf.mxu1  ;;  %1592 = vmatmul.mubr.bf16.vlgmr.msra.gmra.mxu0 %v1672_v5 }
 0x1d9   : > { %v854_v8 = vmax.f32 %v824_v4, 0.0  ;;  %v816_v9 = vadd.f32 %v1853_v34, %v815_v6 }
 0x1da   : > { %v1573_v10 = vpop.f32.mrf.mxu1 }
 0x1db   : > { %v1437_v12 = vpack.c.bf16 %v854_v8, %v853_v7  ;;  %v852_v13 = vmax.f32 %v816_v9, 0.0  ;;  %v837_v16 = vadd.f32 %v1573_v10, %v1853_v34 }
 0x1dc   : > { %v828_v14 = vpop.f32.mrf.mxu1  ;;  %v1674_v21 = vld [vmem:[#allocation3 + $0x18] sm:$0xff]  }
 0x1dd   : > { %1460 = vst [vmem:[#allocation3 + $0x28] sm:$0xff] %v1437_v12   ;;  %v1432_v15 = vpack.c.bf16 %v852_v13, %v851_v11  ;;  %v829_v19 = vadd.f32 %v1853_v34, %v828_v14  ;;  %v857_v23 = vmax.f32 %v837_v16, 0.0 }
 0x1de   : > { %v1574_v17 = vpop.f32.mrf.mxu1  ;;  %v1673_v18 = vld [vmem:[#allocation3 + $0x10] sm:$0xff]  }
 0x1df   : > { %1459 = vst [vmem:[#allocation3 + $0x20] sm:$0xff] %v1432_v15   ;;  %v840_v20 = vadd.f32 %v1574_v17, %v1853_v34  ;;  %1595 = vmatprep.mubr.bf16.mxu0 %v1673_v18  ;;  %v855_v26 = vmax.f32 %v829_v19, 0.0 }
 0x1e0   : > { %v831_v22 = vpop.f32.mrf.mxu1  ;;  %1596 = vmatmul.mubr.bf16.gmra.mxu0 %v1674_v21 }
 0x1e1   : > { %v858_v24 = vmax.f32 %v840_v20, 0.0  ;;  %v832_v25 = vadd.f32 %v1853_v34, %v831_v22  ;;  %v1318_v34 = vld [vmem:[%s1905_s6] ss:$0 sm:$0xff] }
 0x1e3   : > { %v1447_v28 = vpack.c.bf16 %v858_v24, %v857_v23  ;;  %v856_v27 = vmax.f32 %v832_v25, 0.0 }
 0x1e4   : > { %v1676_v31 = vld [vmem:[#allocation3 + $0x28] sm:$0xff]  }
 0x1e5   : > { %1462 = vst [vmem:[#allocation3 + $0x38] sm:$0xff] %v1447_v28   ;;  %v1442_v29 = vpack.c.bf16 %v856_v27, %v855_v26 }
 0x1e6   : > { %v1675_v30 = vld [vmem:[#allocation3 + $0x20] sm:$0xff]  }
 0x1e7   : > { %1461 = vst [vmem:[#allocation3 + $0x30] sm:$0xff] %v1442_v29   ;;  %1599 = vmatprep.mubr.bf16.mxu1 %v1675_v30 }
 0x1e8   : > { %1600 = vmatmul.mubr.bf16.vlgmr.msra.gmra.mxu1 %v1676_v31 }
 0x1ec   : > { %v1678_v33 = vld [vmem:[#allocation3 + $0x38] sm:$0xff]  }
 0x1ee   : > { %v1677_v32 = vld [vmem:[#allocation3 + $0x30] sm:$0xff]  }
 0x1ef   : > { %1603 = vmatprep.mubr.bf16.mxu1 %v1677_v32 }
 0x1f0   : > { %1604 = vmatmul.mubr.bf16.gmra.mxu1 %v1678_v33 }
 0x298   : > { %v1593_v35 = vpop.f32.mrf.mxu0 }
 0x299   : > { %v1117_v36 = vadd.f32 %v1593_v35, %v1318_v34 }
 0x29a   : > { %v1108_v37 = vpop.f32.mrf.mxu0 }
 0x29b   : > { %1173 = vst [vmem:[%s1878_s23 + $0x10] sm:$0xff] %v1117_v36  ;;  %v1109_v38 = vadd.f32 %v1318_v34, %v1108_v37 }
 0x29c   : > { %v1594_v39 = vpop.f32.mrf.mxu0 }
 0x29d   : > { %1171 = vst [vmem:[%s1878_s23] sm:$0xff] %v1109_v38  ;;  %v1120_v40 = vadd.f32 %v1594_v39, %v1318_v34 }
 0x29e   : > { %v1111_v41 = vpop.f32.mrf.mxu0 }
 0x29f   : > { %1174 = vst [vmem:[%s1878_s23 + $0x18] sm:$0xff] %v1120_v40  ;;  %v1112_v42 = vadd.f32 %v1318_v34, %v1111_v41 }
 0x2a0   : > { %v1597_v43 = vpop.f32.mrf.mxu0 }
 0x2a1   : > { %1172 = vst [vmem:[%s1878_s23 + $0x8] sm:$0xff] %v1112_v42  ;;  %v1133_v44 = vadd.f32 %v1597_v43, %v1318_v34 }
 0x2a2   : > { %v1124_v45 = vpop.f32.mrf.mxu0 }
 0x2a3   : > { %1177 = vst [vmem:[%s1878_s23 + $0x30] sm:$0xff] %v1133_v44  ;;  %v1125_v46 = vadd.f32 %v1318_v34, %v1124_v45 }
 0x2a4   : > { %v1598_v47 = vpop.f32.mrf.mxu0 }
 0x2a5   : > { %1175 = vst [vmem:[%s1878_s23 + $0x20] sm:$0xff] %v1125_v46  ;;  %v1136_v48 = vadd.f32 %v1598_v47, %v1318_v34 }
 0x2a6   : > { %v1127_v49 = vpop.f32.mrf.mxu0 }
 0x2a7   : > { %1178 = vst [vmem:[%s1878_s23 + $0x38] sm:$0xff] %v1136_v48  ;;  %v1128_v50 = vadd.f32 %v1318_v34, %v1127_v49 }
 0x2a8   : > { %v1601_v51 = vpop.f32.mrf.mxu1 }
 0x2a9   : > { %1176 = vst [vmem:[%s1878_s23 + $0x28] sm:$0xff] %v1128_v50  ;;  %v1149_v52 = vadd.f32 %v1601_v51, %v1318_v34 }
 0x2aa   : > { %v1140_v53 = vpop.f32.mrf.mxu1 }
 0x2ab   : > { %1181 = vst [vmem:[%s1878_s23 + $0x50] sm:$0xff] %v1149_v52  ;;  %v1141_v54 = vadd.f32 %v1318_v34, %v1140_v53 }
 0x2ac   : > { %v1602_v55 = vpop.f32.mrf.mxu1 }
 0x2ad   : > { %1179 = vst [vmem:[%s1878_s23 + $0x40] sm:$0xff] %v1141_v54  ;;  %v1152_v56 = vadd.f32 %v1602_v55, %v1318_v34 }
 0x2ae   : > { %v1143_v57 = vpop.f32.mrf.mxu1 }
 0x2af   : > { %1182 = vst [vmem:[%s1878_s23 + $0x58] sm:$0xff] %v1152_v56  ;;  %v1144_v58 = vadd.f32 %v1318_v34, %v1143_v57 }
 0x2b0   : > { %v1605_v59 = vpop.f32.mrf.mxu1 }
 0x2b1   : > { %1180 = vst [vmem:[%s1878_s23 + $0x48] sm:$0xff] %v1144_v58  ;;  %v1165_v60 = vadd.f32 %v1605_v59, %v1318_v34 }
 0x2b2   : > { %v1156_v61 = vpop.f32.mrf.mxu1 }
 0x2b3   : > { %1185 = vst [vmem:[%s1878_s23 + $0x70] sm:$0xff] %v1165_v60  ;;  %v1157_v62 = vadd.f32 %v1318_v34, %v1156_v61 }
 0x2b4   : > { %v1606_v63 = vpop.f32.mrf.mxu1 }
 0x2b5   : > { %1183 = vst [vmem:[%s1878_s23 + $0x60] sm:$0xff] %v1157_v62  ;;  %v1168_v0 = vadd.f32 %v1606_v63, %v1318_v34 }
 0x2b6   : > { %v1159_v1 = vpop.f32.mrf.mxu1 }
 0x2b7   : > { %1186 = vst [vmem:[%s1878_s23 + $0x78] sm:$0xff] %v1168_v0  ;;  %v1160_v2 = vadd.f32 %v1318_v34, %v1159_v1 }
 0x2b9   : > { %1184 = vst [vmem:[%s1878_s23 + $0x68] sm:$0xff] %v1160_v2 }
 0x2ba PF: > { %s17_s24 = sadd.s32 1, %s1685_s24  }
 0x2bb   : > { %p14_p4 = scmp.ge.s32.totalorder %s17_s24, 4  }
 0x2bd   :  { %16 = sbr.rel (!%p14_p4) target bundleno = 1 (0x1), region = 78 }

</bundles_post_ra>
